<compile_context>
chip_gen: v5e
topology: v5e:2x2
jax: 0.10.0
libtpu: 0.0.40
codegen_flags: <defaults>
</compile_context>

<pallas_src>
import math
import jax
import jax.numpy as jnp
from jax.experimental import pallas as pl
from jax.experimental.pallas import tpu as pltpu

D_MODEL = 32
N_HEADS = 4
D_FF = 64
EPS = 1e-6

# Optional bf16 MXU operands (f32 accumulation).  Leave False at these tiny
# shapes / the 1e-4 tolerance; flip on if the block is scaled up.
USE_BF16_MATMUL = False


def _mm(a, b):
    if USE_BF16_MATMUL:
        a = a.astype(jnp.bfloat16)
        b = b.astype(jnp.bfloat16)
    return jnp.dot(a, b, preferred_element_type=jnp.float32)


def _recip(d):
    # EUP approximate reciprocal + one Newton-Raphson step: keeps the divide
    # off the VALU while retaining ~f32 accuracy.
    r = pl.reciprocal(d, approx=True)
    return r * (2.0 - d * r)


def _encoder_block_kernel(x_ref, maskb_ref,
                          wqkv_ref, bqkv_ref, wo_ref, bo_ref,
                          w1_ref, b1_ref, w2_ref, b2_ref,
                          kvmask_ref, denmat_ref, ln_ref,
                          out_ref):
    # x_ref block: [Bt, S, D]  (Bt batch elements per grid step)
    Bt, S, D = x_ref.shape
    HS = N_HEADS * S          # key-expanded axis: e = h*S + j

    # Flatten (batch, seq) into one sublane axis: [Bt*S, D] for all matmuls.
    x = x_ref[...].astype(jnp.float32).reshape(Bt * S, D)

    a1 = ln_ref[0]
    be1 = ln_ref[1]
    a2 = ln_ref[2]
    be2 = ln_ref[3]

    def layer_norm(v, alpha, beta):
        mean = jnp.mean(v, axis=-1, keepdims=True)
        # torch.std: unbiased (divide by D - 1)
        var = jnp.sum((v - mean) ** 2, axis=-1, keepdims=True) / (D - 1)
        std = jnp.sqrt(var)
        return alpha * (v - mean) * _recip(std + EPS) + beta

    # ---- sub-layer 1: pre-LN multi-head self-attention + residual ----
    y = layer_norm(x, a1, be1)
    # Fused Q|K|V projection (scale already folded into the Q weights/bias).
    qkv = _mm(y, wqkv_ref[...]) + bqkv_ref[0]            # [Bt*S, 3D]
    q3 = qkv[:, 0:D].reshape(Bt, S, D)                   # [Bt, S, D]
    k3 = qkv[:, D:2 * D].reshape(Bt, S, D)
    v3 = qkv[:, 2 * D:3 * D].reshape(Bt, S, D)

    # Block-diagonal head batching: replicate K/V along the sublane axis
    # (whole 8-row tiles -> layout-trivial) and zero out the columns that do
    # not belong to that replica's head.
    kvm = kvmask_ref[...]                                # [HS, D] 0/1
    k4 = jnp.concatenate([k3] * N_HEADS, axis=1) * kvm   # [Bt, HS, D]
    v4 = jnp.concatenate([v3] * N_HEADS, axis=1) * kvm   # [Bt, HS, D]

    # All-head scores in one batched matmul: s[b, q, h*S + j] = q_h . k_h
    s = jnp.einsum("bqd,bed->bqe", q3, k4,
                   preferred_element_type=jnp.float32)   # [Bt, S, HS]
    s = s + maskb_ref[...][:, None, :]                   # additive -1e9 bias
    # Shared per-(b,q) max across heads: a per-row constant shift, so each
    # head's softmax is unchanged; one reduction instead of four.
    s = s - jnp.max(s, axis=-1, keepdims=True)
    p = jnp.exp(s).reshape(Bt * S, HS)
    # Per-head softmax denominators broadcast to every lane of that head via
    # one [HS, HS] block-of-ones matmul (MXU is idle at these shapes).
    z = jnp.dot(p, denmat_ref[...], preferred_element_type=jnp.float32)
    p = (p * _recip(z)).reshape(Bt, S, HS)
    # PV: emits heads already in torch's concatenated column order.
    attn = jnp.einsum("bqe,bed->bqd", p, v4,
                      preferred_element_type=jnp.float32).reshape(Bt * S, D)

    x1 = x + (_mm(attn, wo_ref[...]) + bo_ref[0])

    # ---- sub-layer 2: pre-LN feed-forward + residual ----
    y2 = layer_norm(x1, a2, be2)
    h1 = jnp.maximum(_mm(y2, w1_ref[...]) + b1_ref[0], 0.0)
    out = x1 + (_mm(h1, w2_ref[...]) + b2_ref[0])

    out_ref[...] = out.reshape(Bt, S, D).astype(out_ref.dtype)


def _default_block_b(B):
    """Generation-aware batch tile: 2 parallel steps on v7x (2 TCs/chip),
    a single grid step on single-TensorCore chips (v5e/v6e)."""
    kind = ""
    try:
        kind = jax.devices()[0].device_kind.lower()
    except Exception:
        pass
    multi_tc = "v7" in kind
    if multi_tc and B >= 2 and B % 2 == 0:
        return B // 2
    return B


def encoder_block(x, src_mask, params, *, block_b=None):
    """x: [B, S, D] float32, src_mask: [B, S] int32."""
    B, S, D = x.shape
    (wq, bq, wk, bk, wv, bv, wo, bo, w1, b1, w2, b2, ln) = params
    dk = D // N_HEADS
    scale = 1.0 / math.sqrt(dk)

    # Fuse Q|K|V weights/biases once in the wrapper; fold the 1/sqrt(dk)
    # score scale into the Q projection (free constant folding).
    wqkv = jnp.concatenate([wq * scale, wk, wv], axis=1)     # [D, 3D]
    bqkv = jnp.concatenate([bq * scale, bk, bv], axis=1)     # [1, 3D]

    # Precomputed additive mask bias, tiled across heads on the key-expanded
    # axis: [B, H*S] f32 (no in-kernel compare/select/convert).
    maskb = jnp.tile(-1e9 * (1.0 - src_mask.astype(jnp.float32)),
                     (1, N_HEADS))                           # [B, H*S]

    # Constant block-diagonal matrices for head batching (built once, XLA
    # folds them; passed as inputs so the kernel needs no in-kernel iota).
    HS = N_HEADS * S
    e_head = jnp.arange(HS) // S                             # head of e
    d_head = jnp.arange(D) // dk                             # head of column d
    kv_mask = (e_head[:, None] == d_head[None, :]).astype(jnp.float32)  # [HS, D]
    den_mat = (e_head[:, None] == e_head[None, :]).astype(jnp.float32)  # [HS, HS]

    if block_b is None:
        block_b = _default_block_b(B)
    assert B % block_b == 0, "B must be divisible by block_b"
    grid = (B // block_b,)

    full2d = lambda shape: pl.BlockSpec(shape, lambda b: (0, 0))

    grid_spec = pltpu.PrefetchScalarGridSpec(
        num_scalar_prefetch=0,
        grid=grid,
        in_specs=[
            pl.BlockSpec((block_b, S, D), lambda b: (b, 0, 0)),   # x
            pl.BlockSpec((block_b, HS), lambda b: (b, 0)),        # mask bias
            full2d((D, 3 * D)), full2d((1, 3 * D)),               # W_qkv, b_qkv
            full2d((D, D)), full2d((1, D)),                       # W_o, b_o
            full2d((D, D_FF)), full2d((1, D_FF)),                 # W_1, b_1
            full2d((D_FF, D)), full2d((1, D)),                    # W_2, b_2
            full2d((HS, D)),                                      # kv_mask
            full2d((HS, HS)),                                     # den_mat
            pl.BlockSpec(memory_space=pltpu.MemorySpace.SMEM),    # ln scalars
        ],
        out_specs=pl.BlockSpec((block_b, S, D), lambda b: (b, 0, 0)),
    )
    return pl.pallas_call(
        _encoder_block_kernel,
        out_shape=jax.ShapeDtypeStruct((B, S, D), x.dtype),
        grid_spec=grid_spec,
        compiler_params=pltpu.CompilerParams(
            dimension_semantics=("parallel",)),
    )(x, maskb, wqkv, bqkv, wo, bo, w1, b1, w2, b2, kv_mask, den_mat, ln)


def _reference(x, src_mask, params):
    """Pure-JAX reference mirroring the PyTorch module semantics (eval mode)."""
    (wq, bq, wk, bk, wv, bv, wo, bo, w1, b1, w2, b2, ln) = params
    B, S, D = x.shape
    dk = D // N_HEADS

    def layer_norm(v, alpha, beta):
        mean = jnp.mean(v, axis=-1, keepdims=True)
        var = jnp.sum((v - mean) ** 2, axis=-1, keepdims=True) / (D - 1)
        std = jnp.sqrt(var)
        return alpha * (v - mean) / (std + EPS) + beta

    y = layer_norm(x, ln[0], ln[1])
    q = y @ wq + bq[0]
    k = y @ wk + bk[0]
    v = y @ wv + bv[0]
    qh = q.reshape(B, S, N_HEADS, dk).transpose(0, 2, 1, 3)
    kh = k.reshape(B, S, N_HEADS, dk).transpose(0, 2, 1, 3)
    vh = v.reshape(B, S, N_HEADS, dk).transpose(0, 2, 1, 3)
    scores = jnp.einsum("bhqd,bhkd->bhqk", qh, kh) / math.sqrt(dk)
    m = src_mask[:, None, None, :]
    scores = jnp.where(m == 0, -1e9, scores)
    p = jax.nn.softmax(scores, axis=-1)
    o = jnp.einsum("bhqk,bhkd->bhqd", p, vh)
    o = o.transpose(0, 2, 1, 3).reshape(B, S, D)
    x1 = x + (o @ wo + bo[0])

    y2 = layer_norm(x1, ln[2], ln[3])
    ff = jnp.maximum(y2 @ w1 + b1[0], 0.0) @ w2 + b2[0]
    return x1 + ff


def _init_params(key):
    ks = jax.random.split(key, 6)
    def w(k, shape):
        return (jax.random.normal(k, shape, jnp.float32) * 0.05)
    wq = w(ks[0], (D_MODEL, D_MODEL)); bq = jnp.zeros((1, D_MODEL), jnp.float32)
    wk = w(ks[1], (D_MODEL, D_MODEL)); bk = jnp.full((1, D_MODEL), 0.01, jnp.float32)
    wv = w(ks[2], (D_MODEL, D_MODEL)); bv = jnp.full((1, D_MODEL), -0.01, jnp.float32)
    wo = w(ks[3], (D_MODEL, D_MODEL)); bo = jnp.full((1, D_MODEL), 0.02, jnp.float32)
    w1 = w(ks[4], (D_MODEL, D_FF));    b1 = jnp.full((1, D_FF), 0.03, jnp.float32)
    w2 = w(ks[5], (D_FF, D_MODEL));    b2 = jnp.full((1, D_MODEL), -0.02, jnp.float32)
    # [alpha1, beta1, alpha2, beta2] — module initializes ones / zeros
    ln = jnp.array([1.0, 0.0, 1.0, 0.0], jnp.float32)
    return (wq, bq, wk, bk, wv, bv, wo, bo, w1, b1, w2, b2, ln)


if __name__ == "__main__":
    key = jax.random.PRNGKey(0)
    k_x, k_p, k_x2, k_m = jax.random.split(key, 4)

    params = _init_params(k_p)

    # ---- canonical small shape: B=2, S=8 ----
    B, S = 2, 8
    x = jax.random.normal(k_x, (B, S, D_MODEL), jnp.float32)
    # mask: last two key positions of batch 1 are padding
    src_mask = jnp.ones((B, S), jnp.int32).at[1, -2:].set(0)

    out = jax.block_until_ready(encoder_block(x, src_mask, params))
    ref = _reference(x, src_mask, params)
    assert out.shape == (B, S, D_MODEL)
    assert jnp.allclose(out, ref, atol=1e-4, rtol=1e-4), (
        f"max abs err {jnp.max(jnp.abs(out - ref))}")

    # ---- coarsened-batch path: B=8 ----
    B2 = 8
    x2 = jax.random.normal(k_x2, (B2, S, D_MODEL), jnp.float32)
    m2 = (jax.random.uniform(k_m, (B2, S)) > 0.2).astype(jnp.int32)
    m2 = m2.at[:, 0].set(1)   # keep at least one attendable key per batch element
    out2 = jax.block_until_ready(encoder_block(x2, m2, params))
    ref2 = _reference(x2, m2, params)
    assert out2.shape == (B2, S, D_MODEL)
    assert jnp.allclose(out2, ref2, atol=1e-4, rtol=1e-4), (
        f"max abs err {jnp.max(jnp.abs(out2 - ref2))}")

    print("KERNEL_OK")
</pallas_src>

<mosaic_0001>
module attributes {stable_mosaic.version = 11 : i64} {
  func.func @_encoder_block_kernel(%arg0: i32, %arg1: memref<2x8x32xf32, #tpu.memory_space<vmem>>, %arg2: memref<2x32xf32, #tpu.memory_space<vmem>>, %arg3: memref<32x96xf32, #tpu.memory_space<vmem>>, %arg4: memref<1x96xf32, #tpu.memory_space<vmem>>, %arg5: memref<32x32xf32, #tpu.memory_space<vmem>>, %arg6: memref<1x32xf32, #tpu.memory_space<vmem>>, %arg7: memref<32x64xf32, #tpu.memory_space<vmem>>, %arg8: memref<1x64xf32, #tpu.memory_space<vmem>>, %arg9: memref<64x32xf32, #tpu.memory_space<vmem>>, %arg10: memref<1x32xf32, #tpu.memory_space<vmem>>, %arg11: memref<32x32xf32, #tpu.memory_space<vmem>>, %arg12: memref<32x32xf32, #tpu.memory_space<vmem>>, %arg13: memref<4xf32, #tpu.memory_space<smem>>, %arg14: memref<2x8x32xf32, #tpu.memory_space<vmem>>) attributes {dimension_semantics = [#tpu.dimension_semantics<parallel>], iteration_bounds = array<i64: 1>, scalar_prefetch = 0 : i64, scratch_operands = 0 : i64, tpu.core_type = #tpu.core_type<tc>, window_params = [{transform_indices = @transform_0, window_bounds = array<i64: 2, 8, 32>}, {transform_indices = @transform_1, window_bounds = array<i64: 2, 32>}, {pipeline_mode = #tpu.pipeline_mode<synchronous>, transform_indices = @transform_2, window_bounds = array<i64: 32, 96>}, {pipeline_mode = #tpu.pipeline_mode<synchronous>, transform_indices = @transform_3, window_bounds = array<i64: 1, 96>}, {pipeline_mode = #tpu.pipeline_mode<synchronous>, transform_indices = @transform_4, window_bounds = array<i64: 32, 32>}, {pipeline_mode = #tpu.pipeline_mode<synchronous>, transform_indices = @transform_5, window_bounds = array<i64: 1, 32>}, {pipeline_mode = #tpu.pipeline_mode<synchronous>, transform_indices = @transform_6, window_bounds = array<i64: 32, 64>}, {pipeline_mode = #tpu.pipeline_mode<synchronous>, transform_indices = @transform_7, window_bounds = array<i64: 1, 64>}, {pipeline_mode = #tpu.pipeline_mode<synchronous>, transform_indices = @transform_8, window_bounds = array<i64: 64, 32>}, {pipeline_mode = #tpu.pipeline_mode<synchronous>, transform_indices = @transform_9, window_bounds = array<i64: 1, 32>}, {pipeline_mode = #tpu.pipeline_mode<synchronous>, transform_indices = @transform_10, window_bounds = array<i64: 32, 32>}, {pipeline_mode = #tpu.pipeline_mode<synchronous>, transform_indices = @transform_11, window_bounds = array<i64: 32, 32>}, {transform_indices = @transform_12, window_bounds = array<i64: 4>}, {transform_indices = @transform_13, window_bounds = array<i64: 2, 8, 32>}]} {
    %c0 = arith.constant 0 : index
    %c0_0 = arith.constant 0 : index
    %c0_1 = arith.constant 0 : index
    %0 = vector.load %arg1[%c0, %c0_0, %c0_1] : memref<2x8x32xf32, #tpu.memory_space<vmem>>, vector<2x8x32xf32>
    %1 = vector.shape_cast %0 : vector<2x8x32xf32> to vector<16x32xf32>
    %c0_2 = arith.constant 0 : index
    %2 = memref.load %arg13[%c0_2] : memref<4xf32, #tpu.memory_space<smem>>
    %c1 = arith.constant 1 : index
    %3 = memref.load %arg13[%c1] : memref<4xf32, #tpu.memory_space<smem>>
    %c2 = arith.constant 2 : index
    %4 = memref.load %arg13[%c2] : memref<4xf32, #tpu.memory_space<smem>>
    %c3 = arith.constant 3 : index
    %5 = memref.load %arg13[%c3] : memref<4xf32, #tpu.memory_space<smem>>
    %cst = arith.constant dense<0.000000e+00> : vector<16xf32>
    %6 = vector.multi_reduction <add>, %1, %cst [1] : vector<16x32xf32> to vector<16xf32>
    %7 = vector.shape_cast %6 : vector<16xf32> to vector<16x1xf32>
    %cst_3 = arith.constant 3.200000e+01 : f32
    %8 = vector.broadcast %cst_3 : f32 to vector<16x1xf32>
    %9 = arith.divf %7, %8 : vector<16x1xf32>
    %10 = vector.broadcast %9 : vector<16x1xf32> to vector<16x32xf32>
    %11 = arith.subf %1, %10 : vector<16x32xf32>
    %12 = arith.mulf %11, %11 : vector<16x32xf32>
    %cst_4 = arith.constant dense<0.000000e+00> : vector<16xf32>
    %13 = vector.multi_reduction <add>, %12, %cst_4 [1] : vector<16x32xf32> to vector<16xf32>
    %14 = vector.shape_cast %13 : vector<16xf32> to vector<16x1xf32>
    %cst_5 = arith.constant 3.100000e+01 : f32
    %15 = vector.broadcast %cst_5 : f32 to vector<16x1xf32>
    %16 = arith.divf %14, %15 : vector<16x1xf32>
    %17 = math.sqrt %16 : vector<16x1xf32>
    %18 = vector.broadcast %9 : vector<16x1xf32> to vector<16x32xf32>
    %19 = arith.subf %1, %18 : vector<16x32xf32>
    %20 = vector.broadcast %2 : f32 to vector<16x32xf32>
    %21 = arith.mulf %20, %19 : vector<16x32xf32>
    %cst_6 = arith.constant 9.99999997E-7 : f32
    %22 = vector.broadcast %cst_6 : f32 to vector<16x1xf32>
    %23 = arith.addf %17, %22 : vector<16x1xf32>
    %24 = tpu.reciprocal %23 {approx = true} : vector<16x1xf32> -> vector<16x1xf32>
    %25 = arith.mulf %23, %24 : vector<16x1xf32>
    %cst_7 = arith.constant 2.000000e+00 : f32
    %26 = vector.broadcast %cst_7 : f32 to vector<16x1xf32>
    %27 = arith.subf %26, %25 : vector<16x1xf32>
    %28 = arith.mulf %24, %27 : vector<16x1xf32>
    %29 = vector.broadcast %28 : vector<16x1xf32> to vector<16x32xf32>
    %30 = arith.mulf %21, %29 : vector<16x32xf32>
    %31 = vector.broadcast %3 : f32 to vector<16x32xf32>
    %32 = arith.addf %30, %31 : vector<16x32xf32>
    %c0_8 = arith.constant 0 : index
    %c0_9 = arith.constant 0 : index
    %33 = vector.load %arg3[%c0_8, %c0_9] : memref<32x96xf32, #tpu.memory_space<vmem>>, vector<32x96xf32>
    %cst_10 = arith.constant dense<0.000000e+00> : vector<16x96xf32>
    %34 = tpu.matmul %32, %33, %cst_10 {dimension_numbers = #tpu.dot_dimension_numbers<[1], [0], [0], [1], [0, 0, 1, 1], [], []>} : vector<16x32xf32>, vector<32x96xf32>, vector<16x96xf32> -> vector<16x96xf32>
    %c0_11 = arith.constant 0 : index
    %c0_12 = arith.constant 0 : index
    %35 = vector.load %arg4[%c0_11, %c0_12] : memref<1x96xf32, #tpu.memory_space<vmem>>, vector<1x96xf32>
    %36 = vector.shape_cast %35 : vector<1x96xf32> to vector<96xf32>
    %37 = vector.shape_cast %36 : vector<96xf32> to vector<1x96xf32>
    %38 = vector.broadcast %37 : vector<1x96xf32> to vector<16x96xf32>
    %39 = arith.addf %34, %38 : vector<16x96xf32>
    %40 = vector.extract_strided_slice %39 {offsets = [0, 0], sizes = [16, 32], strides = [1, 1]} : vector<16x96xf32> to vector<16x32xf32>
    %41 = vector.shape_cast %40 : vector<16x32xf32> to vector<2x8x32xf32>
    %42 = vector.extract_strided_slice %39 {offsets = [0, 32], sizes = [16, 32], strides = [1, 1]} : vector<16x96xf32> to vector<16x32xf32>
    %43 = vector.shape_cast %42 : vector<16x32xf32> to vector<2x8x32xf32>
    %44 = vector.extract_strided_slice %39 {offsets = [0, 64], sizes = [16, 32], strides = [1, 1]} : vector<16x96xf32> to vector<16x32xf32>
    %45 = vector.shape_cast %44 : vector<16x32xf32> to vector<2x8x32xf32>
    %c0_13 = arith.constant 0 : index
    %c0_14 = arith.constant 0 : index
    %46 = vector.load %arg11[%c0_13, %c0_14] : memref<32x32xf32, #tpu.memory_space<vmem>>, vector<32x32xf32>
    %47 = tpu.concatenate %43, %43, %43, %43 in 1 : vector<2x8x32xf32>, vector<2x8x32xf32>, vector<2x8x32xf32>, vector<2x8x32xf32> -> vector<2x32x32xf32>
    %48 = vector.shape_cast %46 : vector<32x32xf32> to vector<1x32x32xf32>
    %49 = vector.broadcast %48 : vector<1x32x32xf32> to vector<2x32x32xf32>
    %50 = arith.mulf %47, %49 : vector<2x32x32xf32>
    %51 = tpu.concatenate %45, %45, %45, %45 in 1 : vector<2x8x32xf32>, vector<2x8x32xf32>, vector<2x8x32xf32>, vector<2x8x32xf32> -> vector<2x32x32xf32>
    %52 = vector.shape_cast %46 : vector<32x32xf32> to vector<1x32x32xf32>
    %53 = vector.broadcast %52 : vector<1x32x32xf32> to vector<2x32x32xf32>
    %54 = arith.mulf %51, %53 : vector<2x32x32xf32>
    "tpu.trace_start"() <{level = 10 : i32, message = "bqd,bed->bqe"}> : () -> ()
    %cst_15 = arith.constant dense<0.000000e+00> : vector<2x8x32xf32>
    %55 = tpu.matmul %41, %50, %cst_15 {dimension_numbers = #tpu.dot_dimension_numbers<[2], [2], [1], [1], [0, 0, 0, 1, 1, 1], [0], [0]>} : vector<2x8x32xf32>, vector<2x32x32xf32>, vector<2x8x32xf32> -> vector<2x8x32xf32>
    "tpu.trace_stop"() : () -> ()
    %c0_16 = arith.constant 0 : index
    %c0_17 = arith.constant 0 : index
    %56 = vector.load %arg2[%c0_16, %c0_17] : memref<2x32xf32, #tpu.memory_space<vmem>>, vector<2x32xf32>
    %57 = vector.shape_cast %56 : vector<2x32xf32> to vector<2x1x32xf32>
    %58 = vector.broadcast %57 : vector<2x1x32xf32> to vector<2x8x32xf32>
    %59 = arith.addf %55, %58 : vector<2x8x32xf32>
    %cst_18 = arith.constant dense<0xFF800000> : vector<2x8xf32>
    %60 = vector.multi_reduction <maximumf>, %59, %cst_18 [2] : vector<2x8x32xf32> to vector<2x8xf32>
    %61 = vector.shape_cast %60 : vector<2x8xf32> to vector<2x8x1xf32>
    %62 = vector.broadcast %61 : vector<2x8x1xf32> to vector<2x8x32xf32>
    %63 = arith.subf %59, %62 : vector<2x8x32xf32>
    %64 = math.exp %63 : vector<2x8x32xf32>
    %65 = vector.shape_cast %64 : vector<2x8x32xf32> to vector<16x32xf32>
    %c0_19 = arith.constant 0 : index
    %c0_20 = arith.constant 0 : index
    %66 = vector.load %arg12[%c0_19, %c0_20] : memref<32x32xf32, #tpu.memory_space<vmem>>, vector<32x32xf32>
    %cst_21 = arith.constant dense<0.000000e+00> : vector<16x32xf32>
    %67 = tpu.matmul %65, %66, %cst_21 {dimension_numbers = #tpu.dot_dimension_numbers<[1], [0], [0], [1], [0, 0, 1, 1], [], []>} : vector<16x32xf32>, vector<32x32xf32>, vector<16x32xf32> -> vector<16x32xf32>
    %68 = tpu.reciprocal %67 {approx = true} : vector<16x32xf32> -> vector<16x32xf32>
    %69 = arith.mulf %67, %68 : vector<16x32xf32>
    %cst_22 = arith.constant 2.000000e+00 : f32
    %70 = vector.broadcast %cst_22 : f32 to vector<16x32xf32>
    %71 = arith.subf %70, %69 : vector<16x32xf32>
    %72 = arith.mulf %68, %71 : vector<16x32xf32>
    %73 = arith.mulf %65, %72 : vector<16x32xf32>
    %74 = vector.shape_cast %73 : vector<16x32xf32> to vector<2x8x32xf32>
    "tpu.trace_start"() <{level = 10 : i32, message = "bqe,bed->bqd"}> : () -> ()
    %cst_23 = arith.constant dense<0.000000e+00> : vector<2x8x32xf32>
    %75 = tpu.matmul %74, %54, %cst_23 {dimension_numbers = #tpu.dot_dimension_numbers<[2], [1], [1], [2], [0, 0, 0, 1, 1, 2], [0], [0]>} : vector<2x8x32xf32>, vector<2x32x32xf32>, vector<2x8x32xf32> -> vector<2x8x32xf32>
    "tpu.trace_stop"() : () -> ()
    %76 = vector.shape_cast %75 : vector<2x8x32xf32> to vector<16x32xf32>
    %c0_24 = arith.constant 0 : index
    %c0_25 = arith.constant 0 : index
    %77 = vector.load %arg5[%c0_24, %c0_25] : memref<32x32xf32, #tpu.memory_space<vmem>>, vector<32x32xf32>
    %cst_26 = arith.constant dense<0.000000e+00> : vector<16x32xf32>
    %78 = tpu.matmul %76, %77, %cst_26 {dimension_numbers = #tpu.dot_dimension_numbers<[1], [0], [0], [1], [0, 0, 1, 1], [], []>} : vector<16x32xf32>, vector<32x32xf32>, vector<16x32xf32> -> vector<16x32xf32>
    %c0_27 = arith.constant 0 : index
    %c0_28 = arith.constant 0 : index
    %79 = vector.load %arg6[%c0_27, %c0_28] : memref<1x32xf32, #tpu.memory_space<vmem>>, vector<1x32xf32>
    %80 = vector.shape_cast %79 : vector<1x32xf32> to vector<32xf32>
    %81 = vector.shape_cast %80 : vector<32xf32> to vector<1x32xf32>
    %82 = vector.broadcast %81 : vector<1x32xf32> to vector<16x32xf32>
    %83 = arith.addf %78, %82 : vector<16x32xf32>
    %84 = arith.addf %1, %83 : vector<16x32xf32>
    %cst_29 = arith.constant dense<0.000000e+00> : vector<16xf32>
    %85 = vector.multi_reduction <add>, %84, %cst_29 [1] : vector<16x32xf32> to vector<16xf32>
    %86 = vector.shape_cast %85 : vector<16xf32> to vector<16x1xf32>
    %cst_30 = arith.constant 3.200000e+01 : f32
    %87 = vector.broadcast %cst_30 : f32 to vector<16x1xf32>
    %88 = arith.divf %86, %87 : vector<16x1xf32>
    %89 = vector.broadcast %88 : vector<16x1xf32> to vector<16x32xf32>
    %90 = arith.subf %84, %89 : vector<16x32xf32>
    %91 = arith.mulf %90, %90 : vector<16x32xf32>
    %cst_31 = arith.constant dense<0.000000e+00> : vector<16xf32>
    %92 = vector.multi_reduction <add>, %91, %cst_31 [1] : vector<16x32xf32> to vector<16xf32>
    %93 = vector.shape_cast %92 : vector<16xf32> to vector<16x1xf32>
    %cst_32 = arith.constant 3.100000e+01 : f32
    %94 = vector.broadcast %cst_32 : f32 to vector<16x1xf32>
    %95 = arith.divf %93, %94 : vector<16x1xf32>
    %96 = math.sqrt %95 : vector<16x1xf32>
    %97 = vector.broadcast %88 : vector<16x1xf32> to vector<16x32xf32>
    %98 = arith.subf %84, %97 : vector<16x32xf32>
    %99 = vector.broadcast %4 : f32 to vector<16x32xf32>
    %100 = arith.mulf %99, %98 : vector<16x32xf32>
    %cst_33 = arith.constant 9.99999997E-7 : f32
    %101 = vector.broadcast %cst_33 : f32 to vector<16x1xf32>
    %102 = arith.addf %96, %101 : vector<16x1xf32>
    %103 = tpu.reciprocal %102 {approx = true} : vector<16x1xf32> -> vector<16x1xf32>
    %104 = arith.mulf %102, %103 : vector<16x1xf32>
    %cst_34 = arith.constant 2.000000e+00 : f32
    %105 = vector.broadcast %cst_34 : f32 to vector<16x1xf32>
    %106 = arith.subf %105, %104 : vector<16x1xf32>
    %107 = arith.mulf %103, %106 : vector<16x1xf32>
    %108 = vector.broadcast %107 : vector<16x1xf32> to vector<16x32xf32>
    %109 = arith.mulf %100, %108 : vector<16x32xf32>
    %110 = vector.broadcast %5 : f32 to vector<16x32xf32>
    %111 = arith.addf %109, %110 : vector<16x32xf32>
    %c0_35 = arith.constant 0 : index
    %c0_36 = arith.constant 0 : index
    %112 = vector.load %arg7[%c0_35, %c0_36] : memref<32x64xf32, #tpu.memory_space<vmem>>, vector<32x64xf32>
    %cst_37 = arith.constant dense<0.000000e+00> : vector<16x64xf32>
    %113 = tpu.matmul %111, %112, %cst_37 {dimension_numbers = #tpu.dot_dimension_numbers<[1], [0], [0], [1], [0, 0, 1, 1], [], []>} : vector<16x32xf32>, vector<32x64xf32>, vector<16x64xf32> -> vector<16x64xf32>
    %c0_38 = arith.constant 0 : index
    %c0_39 = arith.constant 0 : index
    %114 = vector.load %arg8[%c0_38, %c0_39] : memref<1x64xf32, #tpu.memory_space<vmem>>, vector<1x64xf32>
    %115 = vector.shape_cast %114 : vector<1x64xf32> to vector<64xf32>
    %116 = vector.shape_cast %115 : vector<64xf32> to vector<1x64xf32>
    %117 = vector.broadcast %116 : vector<1x64xf32> to vector<16x64xf32>
    %118 = arith.addf %113, %117 : vector<16x64xf32>
    %cst_40 = arith.constant 0.000000e+00 : f32
    %119 = vector.broadcast %cst_40 : f32 to vector<16x64xf32>
    %120 = arith.maximumf %118, %119 : vector<16x64xf32>
    %c0_41 = arith.constant 0 : index
    %c0_42 = arith.constant 0 : index
    %121 = vector.load %arg9[%c0_41, %c0_42] : memref<64x32xf32, #tpu.memory_space<vmem>>, vector<64x32xf32>
    %cst_43 = arith.constant dense<0.000000e+00> : vector<16x32xf32>
    %122 = tpu.matmul %120, %121, %cst_43 {dimension_numbers = #tpu.dot_dimension_numbers<[1], [0], [0], [1], [0, 0, 1, 1], [], []>} : vector<16x64xf32>, vector<64x32xf32>, vector<16x32xf32> -> vector<16x32xf32>
    %c0_44 = arith.constant 0 : index
    %c0_45 = arith.constant 0 : index
    %123 = vector.load %arg10[%c0_44, %c0_45] : memref<1x32xf32, #tpu.memory_space<vmem>>, vector<1x32xf32>
    %124 = vector.shape_cast %123 : vector<1x32xf32> to vector<32xf32>
    %125 = vector.shape_cast %124 : vector<32xf32> to vector<1x32xf32>
    %126 = vector.broadcast %125 : vector<1x32xf32> to vector<16x32xf32>
    %127 = arith.addf %122, %126 : vector<16x32xf32>
    %128 = arith.addf %84, %127 : vector<16x32xf32>
    %129 = vector.shape_cast %128 : vector<16x32xf32> to vector<2x8x32xf32>
    %c0_46 = arith.constant 0 : index
    %c0_47 = arith.constant 0 : index
    %c0_48 = arith.constant 0 : index
    %130 = vector.load %arg14[%c0_46, %c0_47, %c0_48] : memref<2x8x32xf32, #tpu.memory_space<vmem>>, vector<2x8x32xf32>
    tpu.vector_store %arg14[%c0_46, %c0_47, %c0_48], %129 {strides = array<i32>} : memref<2x8x32xf32, #tpu.memory_space<vmem>>, vector<2x8x32xf32>,
    return
  }
  func.func @transform_0(%arg0: i32) -> (i32, i32, i32) {
    %c0_i32 = arith.constant 0 : i32
    %c0_i32_0 = arith.constant 0 : i32
    %c0_i32_1 = arith.constant 0 : i32
    return %arg0, %c0_i32, %c0_i32_0 : i32, i32, i32
  }
  func.func @transform_1(%arg0: i32) -> (i32, i32) {
    %c0_i32 = arith.constant 0 : i32
    %c0_i32_0 = arith.constant 0 : i32
    return %arg0, %c0_i32 : i32, i32
  }
  func.func @transform_2(%arg0: i32) -> (i32, i32) {
    %c0_i32 = arith.constant 0 : i32
    %c0_i32_0 = arith.constant 0 : i32
    %c0_i32_1 = arith.constant 0 : i32
    return %c0_i32, %c0_i32_0 : i32, i32
  }
  func.func @transform_3(%arg0: i32) -> (i32, i32) {
    %c0_i32 = arith.constant 0 : i32
    %c0_i32_0 = arith.constant 0 : i32
    %c0_i32_1 = arith.constant 0 : i32
    return %c0_i32, %c0_i32_0 : i32, i32
  }
  func.func @transform_4(%arg0: i32) -> (i32, i32) {
    %c0_i32 = arith.constant 0 : i32
    %c0_i32_0 = arith.constant 0 : i32
    %c0_i32_1 = arith.constant 0 : i32
    return %c0_i32, %c0_i32_0 : i32, i32
  }
  func.func @transform_5(%arg0: i32) -> (i32, i32) {
    %c0_i32 = arith.constant 0 : i32
    %c0_i32_0 = arith.constant 0 : i32
    %c0_i32_1 = arith.constant 0 : i32
    return %c0_i32, %c0_i32_0 : i32, i32
  }
  func.func @transform_6(%arg0: i32) -> (i32, i32) {
    %c0_i32 = arith.constant 0 : i32
    %c0_i32_0 = arith.constant 0 : i32
    %c0_i32_1 = arith.constant 0 : i32
    return %c0_i32, %c0_i32_0 : i32, i32
  }
  func.func @transform_7(%arg0: i32) -> (i32, i32) {
    %c0_i32 = arith.constant 0 : i32
    %c0_i32_0 = arith.constant 0 : i32
    %c0_i32_1 = arith.constant 0 : i32
    return %c0_i32, %c0_i32_0 : i32, i32
  }
  func.func @transform_8(%arg0: i32) -> (i32, i32) {
    %c0_i32 = arith.constant 0 : i32
    %c0_i32_0 = arith.constant 0 : i32
    %c0_i32_1 = arith.constant 0 : i32
    return %c0_i32, %c0_i32_0 : i32, i32
  }
  func.func @transform_9(%arg0: i32) -> (i32, i32) {
    %c0_i32 = arith.constant 0 : i32
    %c0_i32_0 = arith.constant 0 : i32
    %c0_i32_1 = arith.constant 0 : i32
    return %c0_i32, %c0_i32_0 : i32, i32
  }
  func.func @transform_10(%arg0: i32) -> (i32, i32) {
    %c0_i32 = arith.constant 0 : i32
    %c0_i32_0 = arith.constant 0 : i32
    %c0_i32_1 = arith.constant 0 : i32
    return %c0_i32, %c0_i32_0 : i32, i32
  }
  func.func @transform_11(%arg0: i32) -> (i32, i32) {
    %c0_i32 = arith.constant 0 : i32
    %c0_i32_0 = arith.constant 0 : i32
    %c0_i32_1 = arith.constant 0 : i32
    return %c0_i32, %c0_i32_0 : i32, i32
  }
  func.func @transform_12(%arg0: i32) -> i32 {
    %c0_i32 = arith.constant 0 : i32
    %c0_i32_0 = arith.constant 0 : i32
    return %c0_i32 : i32
  }
  func.func @transform_13(%arg0: i32) -> (i32, i32, i32) {
    %c0_i32 = arith.constant 0 : i32
    %c0_i32_0 = arith.constant 0 : i32
    %c0_i32_1 = arith.constant 0 : i32
    return %arg0, %c0_i32, %c0_i32_0 : i32, i32, i32
  }
}

</mosaic_0001>

<bundles_post_ra>
// kernel: tpu_custom_call.1
= control target key start
LH: loop header
LB: loop body
LE: loop exit
PB: predicated region body
PF: predicated region fallthrough
CT: control target
= control target key end

     0   :  { %18 = vsyncpa [#allocation3], 0  ;;  %s1253_s0 = inlined_call_operand.hbm [shape: f32[2,8,32], index: 0, kind: input, shape index: {}]   ;;  %s1254_s1 = inlined_call_operand.hbm [shape: f32[2,32], index: 1, kind: input, shape index: {}]   ;;  %s1255_s2 = inlined_call_operand.vmem [shape: f32[32,96], index: 2, kind: input, shape index: {}]   ;;  %s1256_s3 = inlined_call_operand.vmem [shape: f32[1,96], index: 3, kind: input, shape index: {}]   ;;  %s1257_s4 = inlined_call_operand.vmem [shape: f32[32,32], index: 4, kind: input, shape index: {}]   ;;  %s1258_s5 = inlined_call_operand.vmem [shape: f32[1,32], index: 5, kind: input, shape index: {}]   ;;  %s1259_s6 = inlined_call_operand.vmem [shape: f32[32,64], index: 6, kind: input, shape index: {}]   ;;  %s1260_s7 = inlined_call_operand.vmem [shape: f32[1,64], index: 7, kind: input, shape index: {}]   ;;  %s1261_s8 = inlined_call_operand.vmem [shape: f32[64,32], index: 8, kind: input, shape index: {}]   ;;  %s1262_s9 = inlined_call_operand.vmem [shape: f32[1,32], index: 9, kind: input, shape index: {}]   ;;  %s1263_s10 = inlined_call_operand.hbm [shape: f32[32,32], index: 10, kind: input, shape index: {}]   ;;  %s1264_s11 = inlined_call_operand.hbm [shape: f32[32,32], index: 11, kind: input, shape index: {}]   ;;  %s1265_s12 = inlined_call_operand.vmem [shape: f32[4], index: 12, kind: input, shape index: {}]   ;;  %s1266_s13 = inlined_call_operand.hbm [shape: f32[2,8,32], index: 13, kind: output, shape index: {}]  }
   0x1   :  { %19 = vsyncpa [#allocation7], 0 }
   0x2   :  { %20 = vsyncpa [#allocation10], 0 }
   0x3   :  { %21 = vsyncpa [#allocation5], 0  ;;  %s41_s27 = sshll.u32 %s1254_s1, 4  ;;  %s42_s27 = int_to_ptr.hbm [resolvable:$true] %s41_s27 }
   0x4   :  { %22 = vsyncpa [#allocation4], 0  ;;  %s953_s28 = smov [#allocation6]   ;;  %s27_s15 = sshll.u32 %s1253_s0, 4  ;;  %s28_s15 = int_to_ptr.hbm [resolvable:$true] %s27_s15 }
   0x5   :  { %s43_s29 = sshll.u32 %s953_s28, 4  ;;  %s954_s16 = smov [#allocation2]   ;;  %s44_s29 = int_to_ptr.vmem [resolvable:$true] %s43_s29 }
   0x6   :  { %46 = dma.hbm_to_vmem [thread:$0]  %s42_s27, 32, %s44_s29, [#allocation7]  }
   0x7   :  { %s29_s17 = sshll.u32 %s954_s16, 4  ;;  %s955_s18 = smov 128   ;;  %s30_s17 = int_to_ptr.vmem [resolvable:$true] %s29_s17 }
   0x8   :  { %s956_s19 = smov 8   ;;  %s67_s21 = sshll.u32 %s1263_s10, 4  ;;  %s68_s21 = int_to_ptr.hbm [resolvable:$true] %s67_s21 }
   0x9   :  { %35 = dma.hbm_to_vmem [thread:$0]  %s28_s15, 256, %s30_s17, [#allocation3], %s955_s18, %s955_s18, %s956_s19  }
   0xa   :  { %s957_s22 = smov [#allocation8]   ;;  %s80_s25 = sshll.u32 %s1264_s11, 4  ;;  %s81_s25 = int_to_ptr.hbm [resolvable:$true] %s80_s25 }
   0xb   :  { %s69_s23 = sshll.u32 %s957_s22, 4  ;;  %s958_s26 = smov [#allocation9]   ;;  %s70_s23 = int_to_ptr.vmem [resolvable:$true] %s69_s23 }
   0xc   :  { %75 = dma.hbm_to_vmem [thread:$0]  %s68_s21, 512, %s70_s23, [#allocation7], %s955_s18, %s955_s18, %s956_s19  }
   0xd   :  { %s82_s27 = sshll.u32 %s958_s26, 4  ;;  %s94_s30 = sshll.u32 %s1265_s12, 4  ;;  %s83_s27 = int_to_ptr.vmem [resolvable:$true] %s82_s27  ;;  %s95_s30 = int_to_ptr.vmem [resolvable:$true] %s94_s30 }
   0xe   :  { %88 = dma.hbm_to_vmem [thread:$0]  %s81_s25, 512, %s83_s27, [#allocation10], %s955_s18, %s955_s18, %s956_s19  }
   0xf   :  { %s959_s10 = smov [#allocation11]  }
  0x10   :  { %97 = dma.vmem_to_smem %s95_s30, 16, %s959_s10, [#allocation5]  }
  0x11   :  { %943 = dma.done.wait [#allocation3], 256  }
  0x12   :  { %944 = vsyncadd [#allocation3], 4294967040 }
  0x13   :  { %945 = dma.done.wait [#allocation7], 544  }
  0x14   :  { %946 = vsyncadd [#allocation7], 4294966752 }
  0x15   :  { %947 = dma.done.wait [#allocation10], 512  }
  0x16   :  { %948 = vsyncadd [#allocation10], 4294966784 }
  0x17   :  { %949 = dma.done.wait [#allocation5], 16  }
  0x18   :  { %950 = vsyncadd [#allocation5], 4294967280 }
  0x19   :  { %118 = sfence }
  0x1a   :  { %v1060_v0 = vld [vmem:[#allocation2] sm:$0xff]  ;;  %vm125_vm0 = vcmask 261120   ;;  %v1064_v2 = vld [vmem:[#allocation2 + $0x8] sm:$0xff]  ;;  %v960_v4 = vmov 32.0   ;;  %v961_v21 = vmov 31.0   ;;  %v205_v25 = vld [vmem:[%s1255_s2 + $0x18] sm:$0xff] }
  0x1b   :  { %v126_v1 = vsel %vm125_vm0, %v1060_v0, 0.0  ;;  %v129_v3 = vsel %vm125_vm0, %v1064_v2, 0.0  ;;  %783 = vrcp.f32 %v960_v4  ;;  %v204_v26 = vld [vmem:[%s1255_s2 + $0x10] sm:$0xff]  ;;  %228 = vmatpush.msra.mxu1 %v205_v25  ;;  %v203_v27 = vld [vmem:[%s1255_s2 + $0x8] sm:$0xff]  ;;  %v202_v29 = vld [vmem:[%s1255_s2] sm:$0xff]  ;;  %s962_s2 = smov 32  }
  0x1c   :  { %127 = vadd.xlane.f32.xlu0 %v126_v1  ;;  %785 = vrcp.f32 %v961_v21  ;;  %v1100_v44 = vld [vmem:[#allocation8 + $0x8] sm:$0xff]  ;;  %v1102_v45 = vld [vmem:[#allocation8] sm:$0xff]  ;;  %v1104_v46 = vld [vmem:[#allocation8 + $0x18] sm:$0xff]  ;;  %s121_s21 = sld [smem:[#allocation11]]  ;;  %s963_s24 = smov 96   ;;  %vm665_vm11 = vcmask 523264  }
  0x1d   :  { %229 = vmatpush.msra.mxu1 %v204_v26  ;;  %253 = vrot.lane.b32.xlu2 %v1104_v46, %s962_s2  ;;  %v241_v56 = vld [vmem:[#allocation8 + $0x10] sm:$0xff]  ;;  %s721_s22 = sld [smem:[#allocation11 + $0x1]] }
  0x1e   :  { %s722_s28 = sld [smem:[#allocation11 + $0x2]] }
  0x1f   :  { %230 = vmatpush.msra.mxu1 %v203_v27  ;;  %s723_s29 = sld [smem:[#allocation11 + $0x3]] }
  0x21   :  { %v784_v5 = vpop.eup %783  ;;  %231 = vmatpush.msra.mxu1 %v202_v29 }
  0x22   :  { %v133_v6 = vmul.f32 32.0, %v784_v5  ;;  %vm137_vm1 = vweird.f32 %v784_v5  ;;  %v786_v22 = vpop.eup %785  ;;  %v184_v1 = vstv %s121_s21 }
  0x23   :  { %v152_v23 = vmul.f32 31.0, %v786_v22  ;;  %vm156_vm2 = vweird.f32 %v786_v22 }
  0x24   :  { %130 = vadd.xlane.f32.xlu0 %v129_v3  ;;  %v134_v7 = vsub.f32 1.0, %v133_v6  ;;  %v199_v6 = vstv %s721_s22 }
  0x25   :  { %v153_v24 = vsub.f32 1.0, %v152_v23  ;;  %251 = vrot.lane.b32.xlu2 %v241_v56, %s962_s2 }
  0x26   :  { %v135_v8 = vmul.f32 %v784_v5, %v134_v7 }
  0x27   :  { %v154_v28 = vmul.f32 %v786_v22, %v153_v24 }
  0x28   :  { %v136_v9 = vadd.f32 %v784_v5, %v135_v8 }
  0x29   :  { %v155_v30 = vadd.f32 %v786_v22, %v154_v28 }
  0x2a   :  { %v1068_v10 = vsel %vm137_vm1, %v784_v5, %v136_v9 }
  0x2b   :  { %v1096_v31 = vsel %vm156_vm2, %v786_v22, %v155_v30 }
  0x38   :  { %249 = vrot.lane.b32.xlu0 %v1100_v44, %s962_s2 }
  0x8f   :  { %v128_v11 = vpop.xlane.xlu0 %127 }
  0x90   :  { %v139_v12 = vmul.f32 %v1068_v10, %v128_v11 }
  0x92   :  { %v1072_v13 = vsub.f32 %v1060_v0, %v139_v12 }
  0x94   :  { %v143_v14 = vmul.f32 %v1072_v13, %v1072_v13  ;;  %v185_v4 = vmul.f32 %v184_v1, %v1072_v13  ;;  %v779_v13 = vld [vmem:[%s1256_s3] ss:$0 sm:$0xff]  ;;  %s964_s3 = smov 64  }
  0x96   :  { %v145_v15 = vsel %vm125_vm0, %v143_v14, 0.0 }
  0x97   :  { %146 = vadd.xlane.f32.xlu1 %v145_v15  ;;  %v131_v16 = vpop.xlane.xlu0 %130 }
  0x98   :  { %v140_v17 = vmul.f32 %v1068_v10, %v131_v16 }
  0x9a   :  { %v1079_v18 = vsub.f32 %v1064_v2, %v140_v17 }
  0x9c   :  { %v144_v19 = vmul.f32 %v1079_v18, %v1079_v18  ;;  %v186_v14 = vmul.f32 %v184_v1, %v1079_v18 }
  0x9e   :  { %v148_v20 = vsel %vm125_vm0, %v144_v19, 0.0  ;;  %v254_v19 = vpop.permute.xlu2 %253 }
  0x9f   :  { %149 = vadd.xlane.f32.xlu1 %v148_v20 }
  0xa6   :  { %v252_v23 = vpop.permute.xlu2 %251 }
  0xaa   :  { %v250_v25 = vpop.permute.xlu0 %249 }
  0xb8   :  { %247 = vrot.lane.b32.xlu1 %v1102_v45, %s962_s2  ;;  %s705_s2 = sshll.u32 %s1266_s13, 4  ;;  %s706_s2 = int_to_ptr.hbm [resolvable:$true] %s705_s2 }
 0x10a   :  { %v147_v32 = vpop.xlane.xlu1 %146 }
 0x10b   :  { %v158_v33 = vmul.f32 %v1096_v31, %v147_v32 }
 0x10d   :  { %787 = vrsqrt.f32 %v158_v33  ;;  %vm167_vm3 = vcmp.eq.f32.partialorder %v158_v33, inf  ;;  %v170_v49 = vand.u32 2147483648, %v158_v33  ;;  %vm169_vm4 = vcmp.eq.f32.partialorder %v158_v33, 0.0 }
 0x112   :  { %v150_v34 = vpop.xlane.xlu1 %149 }
 0x113   :  { %v788_v35 = vpop.eup %787  ;;  %v159_v36 = vmul.f32 %v1096_v31, %v150_v34 }
 0x114   :  { %v161_v37 = vmul.f32 %v788_v35, %v158_v33 }
 0x115   :  { %789 = vrsqrt.f32 %v159_v36  ;;  %vm179_vm5 = vcmp.eq.f32.partialorder %v159_v36, inf  ;;  %v182_v58 = vand.u32 2147483648, %v159_v36  ;;  %vm181_vm6 = vcmp.eq.f32.partialorder %v159_v36, 0.0 }
 0x116   :  { %v162_v38 = vmul.f32 %v788_v35, %v161_v37 }
 0x118   :  { %v163_v39 = vmul.f32 0.5, %v162_v38 }
 0x11a   :  { %v164_v40 = vsub.f32 1.5, %v163_v39 }
 0x11b   :  { %v790_v41 = vpop.eup %789 }
 0x11c   :  { %v173_v42 = vmul.f32 %v790_v41, %v159_v36  ;;  %v165_v43 = vmul.f32 %v788_v35, %v164_v40 }
 0x11e   :  { %v166_v47 = vmul.f32 %v165_v43, %v158_v33  ;;  %v174_v48 = vmul.f32 %v790_v41, %v173_v42 }
 0x120   :  { %v168_v50 = vsel %vm167_vm3, %v158_v33, %v166_v47  ;;  %v175_v51 = vmul.f32 0.5, %v174_v48 }
 0x121   :  { %v171_v52 = vsel %vm169_vm4, %v170_v49, %v168_v50 }
 0x122   :  { %v187_v53 = vadd.f32 1e-06, %v171_v52  ;;  %v176_v54 = vsub.f32 1.5, %v175_v51 }
 0x124   :  { %791 = vrcp.f32 %v187_v53  ;;  %v177_v55 = vmul.f32 %v790_v41, %v176_v54 }
 0x126   :  { %v178_v57 = vmul.f32 %v177_v55, %v159_v36 }
 0x128   :  { %v180_v59 = vsel %vm179_vm5, %v159_v36, %v178_v57 }
 0x129   :  { %v183_v60 = vsel %vm181_vm6, %v182_v58, %v180_v59  ;;  %v287_v59 = vld [vmem:[#allocation6] sm:$0x3] }
 0x12a   :  { %v792_v61 = vpop.eup %791  ;;  %v188_v62 = vadd.f32 1e-06, %v183_v60  ;;  %v248_v29 = vpop.permute.xlu1 %247  ;;  %v290_v60 = vperm.slane %v287_v59, 0 }
 0x12b   :  { %v191_v63 = vmul.f32 %v792_v61, %v187_v53 }
 0x12c   :  { %793 = vrcp.f32 %v188_v62 }
 0x12d   :  { %v193_v3 = vsub.f32 2.0, %v191_v63 }
 0x12f   :  { %v195_v5 = vmul.f32 %v792_v61, %v193_v3  ;;  %v289_v61 = vrot.slane %v287_v59, 1 }
 0x131   :  { %v197_v7 = vmul.f32 %v195_v5, %v185_v4  ;;  %v291_v3 = vperm.slane %v289_v61, 0 }
 0x132   :  { %v794_v8 = vpop.eup %793 }
 0x133   :  { %v200_v9 = vadd.f32 %v199_v6, %v197_v7  ;;  %v192_v11 = vmul.f32 %v794_v8, %v188_v62 }
 0x135   :  { %724 = vmatmul.msk.f32.vlgmr.msra.gmra.mxu1 %vm125_vm0, %v200_v9  ;;  %v194_v12 = vsub.f32 2.0, %v192_v11  ;;  %v395_v11 = vld [vmem:[#allocation9 + $0x18] sm:$0xff] }
 0x136   :  { %414 = vmatpush.msra.mxu3 %v395_v11 }
 0x137   :  { %v196_v15 = vmul.f32 %v794_v8, %v194_v12  ;;  %v394_v12 = vld [vmem:[#allocation9 + $0x10] sm:$0xff] }
 0x138   :  { %415 = vmatpush.msra.mxu3 %v394_v12 }
 0x139   :  { %v198_v16 = vmul.f32 %v196_v15, %v186_v14  ;;  %v393_v14 = vld [vmem:[#allocation9 + $0x8] sm:$0xff]  ;;  %v392_v15 = vld [vmem:[#allocation9] sm:$0xff] }
 0x13a   :  { %416 = vmatpush.msra.mxu3 %v393_v14 }
 0x13b   :  { %v201_v17 = vadd.f32 %v199_v6, %v198_v16 }
 0x13c   :  { %417 = vmatpush.msra.mxu3 %v392_v15 }
 0x13d   :  { %725 = vmatmul.msk.f32.gmra.mxu1 %vm125_vm0, %v201_v17 }
 0x1b2   :  { %v233_v20 = vpop.f32.mrf.mxu1 }
 0x1b3   :  { %v1116_v21 = vadd.f32 %v779_v13, %v233_v20 }
 0x1b5   :  { %v262_v22 = vmul.f32 %v254_v19, %v1116_v21  ;;  %v261_v26 = vmul.f32 %v252_v23, %v1116_v21  ;;  %v259_v30 = vmul.f32 %v248_v29, %v1116_v21  ;;  %v260_v33 = vmul.f32 %v250_v25, %v1116_v21 }
 0x1b7   :  { %304 = vrot.lane.b32.xlu2 %v262_v22, %s963_s24 }
 0x1ba   :  { %v236_v24 = vpop.f32.mrf.mxu1 }
 0x1bb   :  { %v237_v18 = vadd.f32 %v779_v13, %v236_v24 }
 0x1bd   :  { %v265_v27 = vmul.f32 %v252_v23, %v237_v18  ;;  %v264_v28 = vmul.f32 %v250_v25, %v237_v18  ;;  %v266_v32 = vmul.f32 %v254_v19, %v237_v18  ;;  %v263_v34 = vmul.f32 %v248_v29, %v237_v18 }
 0x1bf   :  { %302 = vrot.lane.b32.xlu2 %v261_v26, %s963_s24  ;;  %345 = vrot.lane.b32.xlu0 %v265_v27, %s963_s24 }
 0x1c0   :  { %343 = vrot.lane.b32.xlu1 %v264_v28, %s963_s24 }
 0x1c7   :  { %347 = vrot.lane.b32.xlu2 %v266_v32, %s963_s24  ;;  %298 = vrot.lane.b32.xlu0 %v259_v30, %s963_s24 }
 0x1cf   :  { %300 = vrot.lane.b32.xlu2 %v260_v33, %s963_s24  ;;  %v516_v33 = vld [vmem:[%s1257_s4 + $0x18] sm:$0xff] }
 0x1d7   :  { %341 = vrot.lane.b32.xlu2 %v263_v34, %s963_s24  ;;  %v515_v34 = vld [vmem:[%s1257_s4 + $0x10] sm:$0xff] }
 0x1df   :  { %273 = vrot.lane.b32.xlu2 %v1104_v46, %s964_s3 }
 0x1e7   :  { %271 = vrot.lane.b32.xlu2 %v241_v56, %s964_s3 }
 0x1ef   :  { %269 = vrot.lane.b32.xlu2 %v1100_v44, %s964_s3 }
 0x1f7   :  { %267 = vrot.lane.b32.xlu2 %v1102_v45, %s964_s3 }
 0x211   :  { %v305_v35 = vpop.permute.xlu2 %304 }
 0x212   :  { %726 = vmatpush.xpose.msk.msrb.mxu1 %vm125_vm0, %v305_v35  ;;  %v514_v35 = vld [vmem:[%s1257_s4 + $0x8] sm:$0xff] }
 0x219   :  { %v303_v36 = vpop.permute.xlu2 %302 }
 0x21a   :  { %727 = vmatpush.xpose.msk.msrb.mxu1 %vm125_vm0, %v303_v36 }
 0x221   :  { %v348_v37 = vpop.permute.xlu2 %347 }
 0x222   :  { %731 = vmatpush.xpose.msk.msra.mxu2 %vm125_vm0, %v348_v37 }
 0x229   :  { %v301_v38 = vpop.permute.xlu2 %300 }
 0x22a   :  { %728 = vmatpush.xpose.msk.msrb.mxu1 %vm125_vm0, %v301_v38 }
 0x231   :  { %v342_v39 = vpop.permute.xlu2 %341  ;;  %v346_v40 = vpop.permute.xlu0 %345 }
 0x232   :  { %732 = vmatpush.xpose.msk.msra.mxu2 %vm125_vm0, %v346_v40  ;;  %v344_v41 = vpop.permute.xlu1 %343 }
 0x236   :  { %733 = vmatpush.xpose.msk.msra.mxu2 %vm125_vm0, %v344_v41 }
 0x239   :  { %v274_v42 = vpop.permute.xlu2 %273  ;;  %v299_v43 = vpop.permute.xlu0 %298 }
 0x23a   :  { %729 = vmatpush.xpose.msk.msrb.mxu1 %vm125_vm0, %v299_v43  ;;  %734 = vmatpush.xpose.msk.msra.mxu2 %vm125_vm0, %v342_v39  ;;  %v282_v45 = vmul.f32 %v274_v42, %v1116_v21  ;;  %v286_v46 = vmul.f32 %v274_v42, %v237_v18 }
 0x23d   :  { %730 = vmatmul.msk.f32.vlgmr.msrb.gmra.mxu1 %vm125_vm0, %v1116_v21  ;;  %735 = vmatmul.msk.f32.vlgmr.msra.gmra.mxu2 %vm125_vm0, %v237_v18 }
 0x23e   :  { %539 = vmatpush.msrb.mxu2 %v516_v33 }
 0x240   :  { %540 = vmatpush.msrb.mxu2 %v515_v34  ;;  %v656_v34 = vld [vmem:[%s1261_s8 + $0x18] sm:$0xff] }
 0x241   :  { %v272_v44 = vpop.permute.xlu2 %271 }
 0x242   :  { %v285_v47 = vmul.f32 %v272_v44, %v237_v18  ;;  %v281_v48 = vmul.f32 %v272_v44, %v1116_v21  ;;  %541 = vmatpush.msrb.mxu2 %v514_v35 }
 0x244   :  { %v769_v49 = vpack.i.bf16 %v285_v47, %v286_v46  ;;  %v759_v50 = vpack.i.bf16 %v281_v48, %v282_v45  ;;  %v513_v48 = vld [vmem:[%s1257_s4] sm:$0xff] }
 0x245   :  { %542 = vmatpush.msrb.mxu2 %v513_v48 }
 0x246   :  { %760 = vrot.lane.b32.xlu2 %v759_v50, %s964_s3 }
 0x249   :  { %v270_v51 = vpop.permute.xlu2 %269 }
 0x24a   :  { %v284_v53 = vmul.f32 %v270_v51, %v237_v18  ;;  %v280_v8 = vmul.f32 %v270_v51, %v1116_v21  ;;  %v780_v51 = vld [vmem:[%s1258_s5] ss:$0 sm:$0xff] }
 0x251   :  { %v268_v52 = vpop.permute.xlu2 %267 }
 0x252   :  { %v283_v54 = vmul.f32 %v268_v52, %v237_v18  ;;  %v279_v7 = vmul.f32 %v268_v52, %v1116_v21 }
 0x254   :  { %v774_v55 = vpack.i.bf16 %v283_v54, %v284_v53  ;;  %v764_v9 = vpack.i.bf16 %v279_v7, %v280_v8  ;;  %v616_v7 = vld [vmem:[%s1259_s6 + $0x10] sm:$0xff]  ;;  %v614_v8 = vld [vmem:[%s1259_s6] sm:$0xff] }
 0x256   :  { %775 = vrot.lane.b32.xlu2 %v774_v55, %s964_s3 }
 0x2a0   :  { %v761_v56 = vpop.permute.xlu2 %760 }
 0x2a1   :  { %v762_v57 = vunpack.i.l.bf16 %v761_v56  ;;  %v763_v58 = vunpack.i.h.bf16 %v761_v56 }
 0x2a3   :  { %466 = vmatpush.msra.mxu0 %v762_v57 }
 0x2a5   :  { %467 = vmatpush.msra.mxu0 %v763_v58 }
 0x2b0   :  { %v776_v27 = vpop.permute.xlu2 %775 }
 0x2b1   :  { %v777_v30 = vunpack.i.l.bf16 %v776_v27  ;;  %v778_v32 = vunpack.i.h.bf16 %v776_v27 }
 0x2ba   :  { %v334_v62 = vpop.f32.mrf.mxu1 }
 0x2bb   :  { %v335_v63 = vadd.f32 %v334_v62, %v290_v60 }
 0x2bd   :  { %v380_v1 = vsel %vm125_vm0, %v335_v63, -inf }
 0x2be   :  { %381 = vmax.xlane.f32.xlu1 %v380_v1 }
 0x2c0   :  { %v377_v4 = vpop.f32.mrf.mxu2 }
 0x2c1   :  { %v378_v5 = vadd.f32 %v377_v4, %v291_v3 }
 0x2c3   :  { %v383_v6 = vsel %vm125_vm0, %v378_v5, -inf }
 0x2c4   :  { %384 = vmax.xlane.f32.xlu0 %v383_v6  ;;  %v617_v6 = vld [vmem:[%s1259_s6 + $0x18] sm:$0xff] }
 0x2c5   :  { %640 = vmatpush.msrb.mxu3 %v617_v6 }
 0x2c7   :  { %641 = vmatpush.msrb.mxu3 %v616_v7 }
 0x2d7   :  { %765 = vrot.lane.b32.xlu1 %v764_v9, %s964_s3 }
 0x2d8   :  { %770 = vrot.lane.b32.xlu0 %v769_v49, %s964_s3 }
 0x331   :  { %v382_v16 = vpop.xlane.xlu1 %381 }
 0x332   :  { %v386_v17 = vsub.f32 %v335_v63, %v382_v16 }
 0x334   :  { %v388_v13 = vmul.f32 1.442695, %v386_v17 }
 0x336   :  { %795 = vpow2.f32 %v388_v13 }
 0x337   :  { %v385_v19 = vpop.xlane.xlu0 %384 }
 0x338   :  { %v387_v20 = vsub.f32 %v378_v5, %v385_v19 }
 0x33a   :  { %v390_v21 = vmul.f32 1.442695, %v387_v20 }
 0x33c   :  { %v796_v22 = vpop.eup %795  ;;  %797 = vpow2.f32 %v390_v21 }
 0x33d   :  { %736 = vmatmul.msk.f32.vlgmr.msra.gmra.mxu3 %vm125_vm0, %v796_v22 }
 0x342   :  { %v798_v23 = vpop.eup %797 }
 0x345   :  { %737 = vmatmul.msk.f32.gmra.mxu3 %vm125_vm0, %v798_v23 }
 0x349   :  { %v766_v24 = vpop.permute.xlu1 %765 }
 0x34a   :  { %v771_v18 = vpop.permute.xlu0 %770  ;;  %v767_v25 = vunpack.i.l.bf16 %v766_v24  ;;  %v768_v28 = vunpack.i.h.bf16 %v766_v24  ;;  %v659_v24 = vld [vmem:[%s1261_s8 + $0x30] sm:$0xff] }
 0x34b   :  { %v772_v26 = vunpack.i.l.bf16 %v771_v18  ;;  %v773_v29 = vunpack.i.h.bf16 %v771_v18 }
 0x34c   :  { %468 = vmatpush.msra.mxu0 %v767_v25 }
 0x34d   :  { %505 = vmatpush.msra.mxu1 %v772_v26  ;;  %v658_v26 = vld [vmem:[%s1261_s8 + $0x28] sm:$0xff] }
 0x34e   :  { %469 = vmatpush.msra.mxu0 %v768_v28 }
 0x34f   :  { %506 = vmatpush.msra.mxu1 %v773_v29 }
 0x351   :  { %507 = vmatpush.msra.mxu1 %v777_v30  ;;  %v657_v30 = vld [vmem:[%s1261_s8 + $0x20] sm:$0xff] }
 0x353   :  { %508 = vmatpush.msra.mxu1 %v778_v32 }
 0x3c0   :  { %v419_v36 = vpop.f32.mrf.mxu3 }
 0x3c1   :  { %799 = vrcp.f32 %v419_v36 }
 0x3c7   :  { %v800_v37 = vpop.eup %799 }
 0x3c8   :  { %v427_v38 = vmul.f32 %v800_v37, %v419_v36  ;;  %v422_v39 = vpop.f32.mrf.mxu3 }
 0x3c9   :  { %801 = vrcp.f32 %v422_v39 }
 0x3ca   :  { %v429_v40 = vsub.f32 2.0, %v427_v38 }
 0x3cc   :  { %v431_v41 = vmul.f32 %v800_v37, %v429_v40 }
 0x3ce   :  { %v433_v42 = vmul.f32 %v796_v22, %v431_v41 }
 0x3cf   :  { %v802_v43 = vpop.eup %801 }
 0x3d0   :  { %v428_v44 = vmul.f32 %v802_v43, %v422_v39  ;;  %738 = vmatmul.msk.f32.vlgmr.msra.gmra.mxu0 %vm125_vm0, %v433_v42 }
 0x3d2   :  { %v430_v45 = vsub.f32 2.0, %v428_v44 }
 0x3d4   :  { %v432_v46 = vmul.f32 %v802_v43, %v430_v45  ;;  %v596_v43 = vstv %s722_s28 }
 0x3d6   :  { %v434_v47 = vmul.f32 %v798_v23, %v432_v46  ;;  %v660_v23 = vld [vmem:[%s1261_s8 + $0x38] sm:$0xff] }
 0x3d7   :  { %680 = vmatpush.msrb.mxu0 %v660_v23 }
 0x3d8   :  { %739 = vmatmul.msk.f32.vlgmr.msra.gmra.mxu1 %vm125_vm0, %v434_v47  ;;  %v611_v47 = vstv %s723_s29 }
 0x3d9   :  { %681 = vmatpush.msrb.mxu0 %v659_v24 }
 0x3db   :  { %682 = vmatpush.msrb.mxu0 %v658_v26 }
 0x3dd   :  { %683 = vmatpush.msrb.mxu0 %v657_v30 }
 0x3df   :  { %684 = vmatpush.msrb.mxu0 %v656_v34 }
 0x44d   :  { %v471_v49 = vpop.f32.mrf.mxu0 }
 0x44e   :  { %740 = vmatmul.msk.f32.vlgmr.msrb.gmra.mxu2 %vm125_vm0, %v471_v49 }
 0x455   :  { %v510_v50 = vpop.f32.mrf.mxu1 }
 0x456   :  { %741 = vmatmul.msk.f32.gmra.mxu2 %vm125_vm0, %v510_v50 }
 0x4d1   :  { %v544_v52 = vpop.f32.mrf.mxu2 }
 0x4d2   :  { %v545_v53 = vadd.f32 %v780_v51, %v544_v52 }
 0x4d4   :  { %v1172_v54 = vadd.f32 %v545_v53, %v1060_v0 }
 0x4d6   :  { %v552_v55 = vsel %vm125_vm0, %v1172_v54, 0.0 }
 0x4d7   :  { %553 = vadd.xlane.f32.xlu2 %v552_v55 }
 0x4d9   :  { %v547_v56 = vpop.f32.mrf.mxu2 }
 0x4da   :  { %v548_v57 = vadd.f32 %v780_v51, %v547_v56 }
 0x4dc   :  { %v1177_v58 = vadd.f32 %v548_v57, %v1064_v2 }
 0x4de   :  { %v555_v59 = vsel %vm125_vm0, %v1177_v58, 0.0 }
 0x4df   :  { %556 = vadd.xlane.f32.xlu0 %v555_v59  ;;  %v655_v59 = vld [vmem:[%s1261_s8 + $0x10] sm:$0xff] }
 0x4e0   :  { %685 = vmatpush.msrb.mxu0 %v655_v59 }
 0x54a   :  { %v554_v60 = vpop.xlane.xlu2 %553 }
 0x54b   :  { %v558_v61 = vmul.f32 %v554_v60, %v1068_v10  ;;  %v654_v60 = vld [vmem:[%s1261_s8 + $0x8] sm:$0xff] }
 0x54c   :  { %686 = vmatpush.msrb.mxu0 %v654_v60 }
 0x54d   :  { %v1183_v62 = vsub.f32 %v1172_v54, %v558_v61  ;;  %v653_v61 = vld [vmem:[%s1261_s8] sm:$0xff] }
 0x54e   :  { %687 = vmatpush.msrb.mxu0 %v653_v61 }
 0x54f   :  { %v562_v0 = vmul.f32 %v1183_v62, %v1183_v62  ;;  %v597_v45 = vmul.f32 %v596_v43, %v1183_v62  ;;  %v781_v62 = vld [vmem:[%s1260_s7] ss:$0 sm:$0xff]  ;;  %s965_s7 = smov [#allocation12]  }
 0x550   :  { %s703_s8 = sshll.u32 %s965_s7, 4  ;;  %s704_s8 = int_to_ptr.vmem [resolvable:$true] %s703_s8 }
 0x551   :  { %v564_v63 = vsel %vm125_vm0, %v562_v0, 0.0 }
 0x552   :  { %565 = vadd.xlane.f32.xlu1 %v564_v63  ;;  %v557_v1 = vpop.xlane.xlu0 %556 }
 0x553   :  { %v559_v2 = vmul.f32 %v557_v1, %v1068_v10  ;;  %v615_v10 = vld [vmem:[%s1259_s6 + $0x8] sm:$0xff] }
 0x554   :  { %642 = vmatpush.msrb.mxu3 %v615_v10 }
 0x555   :  { %v1190_v3 = vsub.f32 %v1177_v58, %v559_v2 }
 0x556   :  { %643 = vmatpush.msrb.mxu3 %v614_v8 }
 0x557   :  { %v563_v4 = vmul.f32 %v1190_v3, %v1190_v3  ;;  %v598_v53 = vmul.f32 %v596_v43, %v1190_v3 }
 0x559   :  { %v567_v5 = vsel %vm125_vm0, %v563_v4, 0.0 }
 0x55a   :  { %568 = vadd.xlane.f32.xlu2 %v567_v5  ;;  %v782_v5 = vld [vmem:[%s1262_s9] ss:$0 sm:$0xff] }
 0x5c5   :  { %v566_v9 = vpop.xlane.xlu1 %565 }
 0x5c6   :  { %v570_v11 = vmul.f32 %v566_v9, %v1096_v31 }
 0x5c8   :  { %803 = vrsqrt.f32 %v570_v11  ;;  %vm579_vm7 = vcmp.eq.f32.partialorder %v570_v11, inf  ;;  %vm581_vm8 = vcmp.eq.f32.partialorder %v570_v11, 0.0 }
 0x5cd   :  { %v569_v12 = vpop.xlane.xlu2 %568 }
 0x5ce   :  { %v804_v14 = vpop.eup %803  ;;  %v571_v15 = vmul.f32 %v569_v12, %v1096_v31  ;;  %v582_v31 = vand.u32 2147483648, %v570_v11 }
 0x5cf   :  { %v573_v16 = vmul.f32 %v804_v14, %v570_v11 }
 0x5d0   :  { %805 = vrsqrt.f32 %v571_v15  ;;  %vm591_vm9 = vcmp.eq.f32.partialorder %v571_v15, inf  ;;  %v594_v37 = vand.u32 2147483648, %v571_v15  ;;  %vm593_vm10 = vcmp.eq.f32.partialorder %v571_v15, 0.0 }
 0x5d1   :  { %v574_v17 = vmul.f32 %v804_v14, %v573_v16 }
 0x5d3   :  { %v575_v13 = vmul.f32 0.5, %v574_v17 }
 0x5d5   :  { %v576_v19 = vsub.f32 1.5, %v575_v13 }
 0x5d6   :  { %v806_v20 = vpop.eup %805 }
 0x5d7   :  { %v585_v21 = vmul.f32 %v806_v20, %v571_v15  ;;  %v577_v22 = vmul.f32 %v804_v14, %v576_v19 }
 0x5d9   :  { %v578_v18 = vmul.f32 %v577_v22, %v570_v11  ;;  %v586_v25 = vmul.f32 %v806_v20, %v585_v21 }
 0x5db   :  { %v580_v27 = vsel %vm579_vm7, %v570_v11, %v578_v18  ;;  %v587_v28 = vmul.f32 0.5, %v586_v25 }
 0x5dc   :  { %v583_v29 = vsel %vm581_vm8, %v582_v31, %v580_v27 }
 0x5dd   :  { %v599_v32 = vadd.f32 1e-06, %v583_v29  ;;  %v588_v33 = vsub.f32 1.5, %v587_v28 }
 0x5df   :  { %807 = vrcp.f32 %v599_v32  ;;  %v589_v35 = vmul.f32 %v806_v20, %v588_v33 }
 0x5e1   :  { %v590_v36 = vmul.f32 %v589_v35, %v571_v15 }
 0x5e3   :  { %v592_v38 = vsel %vm591_vm9, %v571_v15, %v590_v36 }
 0x5e4   :  { %v595_v39 = vsel %vm593_vm10, %v594_v37, %v592_v38 }
 0x5e5   :  { %v808_v40 = vpop.eup %807  ;;  %v600_v41 = vadd.f32 1e-06, %v595_v39 }
 0x5e6   :  { %v603_v42 = vmul.f32 %v808_v40, %v599_v32 }
 0x5e7   :  { %809 = vrcp.f32 %v600_v41 }
 0x5e8   :  { %v605_v44 = vsub.f32 2.0, %v603_v42 }
 0x5ea   :  { %v607_v46 = vmul.f32 %v808_v40, %v605_v44 }
 0x5ec   :  { %v609_v48 = vmul.f32 %v607_v46, %v597_v45 }
 0x5ed   :  { %v810_v49 = vpop.eup %809 }
 0x5ee   :  { %v612_v50 = vadd.f32 %v611_v47, %v609_v48  ;;  %v604_v51 = vmul.f32 %v810_v49, %v600_v41 }
 0x5f0   :  { %742 = vmatmul.msk.f32.vlgmr.msrb.gmra.mxu3 %vm125_vm0, %v612_v50  ;;  %v606_v52 = vsub.f32 2.0, %v604_v51 }
 0x5f2   :  { %v608_v55 = vmul.f32 %v810_v49, %v606_v52 }
 0x5f4   :  { %v610_v56 = vmul.f32 %v608_v55, %v598_v53 }
 0x5f6   :  { %v613_v57 = vadd.f32 %v611_v47, %v610_v56 }
 0x5f8   :  { %743 = vmatmul.msk.f32.gmra.mxu3 %vm125_vm0, %v613_v57 }
 0x673   :  { %v645_v0 = vpop.f32.mrf.mxu3 }
 0x674   :  { %v646_v63 = vadd.f32 %v781_v62, %v645_v0 }
 0x676   :  { %v651_v1 = vmax.f32 %v646_v63, 0.0 }
 0x678   :  { %744 = vmatmul.msk.f32.vlgmr.msrb.gmra.mxu0 %vm665_vm11, %v651_v1 }
 0x67b   :  { %v648_v2 = vpop.f32.mrf.mxu3 }
 0x67c   :  { %v649_v3 = vadd.f32 %v781_v62, %v648_v2 }
 0x67e   :  { %v652_v4 = vmax.f32 %v649_v3, 0.0 }
 0x680   :  { %745 = vmatmul.msk.f32.gmra.mxu0 %vm665_vm11, %v652_v4 }
 0x6f5   :  { %v689_v6 = vpop.f32.mrf.mxu0 }
 0x6f6   :  { %v690_v7 = vadd.f32 %v782_v5, %v689_v6 }
 0x6f8   :  { %v695_v10 = vadd.f32 %v690_v7, %v1172_v54 }
 0x6fa   :  { %697 = vst.msk [vmem:[#allocation12] sm:$0xff] %vm125_vm0, %v695_v10 }
 0x6fd   :  { %v692_v8 = vpop.f32.mrf.mxu0 }
 0x6fe   :  { %v693_v9 = vadd.f32 %v782_v5, %v692_v8 }
 0x700   :  { %v696_v11 = vadd.f32 %v693_v9, %v1177_v58 }
 0x702   :  { %698 = vst.msk [vmem:[#allocation12 + $0x8] sm:$0xff] %vm125_vm0, %v696_v11 }
 0x703   :  { %711 = dma.vmem_to_hbm [thread:$0]  %s704_s8, 256, %s706_s2, [#allocation4], %s955_s18, %s955_s18, %s956_s19  }
 0x704   :  { %951 = dma.done.wait [#allocation4], 256  }
 0x705   :  { %952 = vsyncadd [#allocation4], 4294967040 }
 0x706   :  { %716 = vsyncpa [#allocation3], 1 }
 0x707   :  { %717 = vsyncpa [#allocation7], 1 }
 0x708   :  { %718 = vsyncpa [#allocation10], 1 }
 0x709   :  { %719 = vsyncpa [#allocation4], 1 }
 0x70a   :  { %720 = vsyncpa [#allocation5], 1 }

</bundles_post_ra>
